<compile_context>
chip_gen: v6e
topology: v6e:2x2x1
jax: 0.10.0
libtpu: 0.0.40
codegen_flags: <defaults>
</compile_context>

<pallas_src>
import jax
import jax.numpy as jnp
from jax.experimental import pallas as pl
from jax.experimental.pallas import tpu as pltpu


def _round_up(n: int, m: int) -> int:
    return ((n + m - 1) // m) * m


def mlp_kernel(x_ref, w1_ref, b1_ref, w2_ref, b2_ref, out_ref):
    # x_ref:  (TB, F) compute dtype     w1_ref: (F, H) compute dtype
    # b1_ref: (1, H)  f32               w2_ref: (H, O) compute dtype
    # b2_ref: (1, O)  f32               out_ref: (TB, O) f32
    # Hidden layer: MXU matmul with f32 accumulation, then f32 bias + ReLU.
    h = jnp.dot(x_ref[...], w1_ref[...], preferred_element_type=jnp.float32)
    h = jnp.maximum(h + b1_ref[...], 0.0)
    # Output layer: cast activations to the MXU-native operand dtype for the
    # second matmul only; accumulation and bias-add remain f32.
    y = jnp.dot(h.astype(w2_ref.dtype), w2_ref[...],
                preferred_element_type=jnp.float32)
    out_ref[...] = (y + b2_ref[...]).astype(out_ref.dtype)


def net_forward(x, w1, b1, w2, b2, *, block_b=1024,
                compute_dtype=jnp.bfloat16):
    """Pallas forward pass for Net.

    x : (B, F) float32
    w1: (F, H) (transposed vs. PyTorch's (H, F))
    b1: (H,)
    w2: (H, O) (transposed vs. PyTorch's (O, H))
    b2: (O,)
    returns (B, O) float32
    """
    B, F = x.shape
    H = w1.shape[1]
    O = w2.shape[1]

    # Batch tile: multiple of 8 sublanes, capped at block_b.  Pad the batch so
    # every grid step sees a full (TB, F) block; padded rows are sliced off.
    tb = min(block_b, _round_up(B, 8))
    tb = _round_up(tb, 8)
    b_pad = _round_up(B, tb)
    if b_pad != B:
        x = jnp.pad(x, ((0, b_pad - B), (0, 0)))

    # bf16 streaming for the matmul operands; f32 biases.
    x_c = x.astype(compute_dtype)
    w1_c = w1.astype(compute_dtype)
    w2_c = w2.astype(compute_dtype)
    b1_2d = b1.reshape(1, H).astype(jnp.float32)
    b2_2d = b2.reshape(1, O).astype(jnp.float32)

    grid = (b_pad // tb,)

    out = pl.pallas_call(
        mlp_kernel,
        out_shape=jax.ShapeDtypeStruct((b_pad, O), jnp.float32),
        grid=grid,
        in_specs=[
            pl.BlockSpec((tb, F), lambda i: (i, 0)),   # x streams over batch
            pl.BlockSpec((F, H), lambda i: (0, 0)),    # weights stay resident
            pl.BlockSpec((1, H), lambda i: (0, 0)),
            pl.BlockSpec((H, O), lambda i: (0, 0)),
            pl.BlockSpec((1, O), lambda i: (0, 0)),
        ],
        out_specs=pl.BlockSpec((tb, O), lambda i: (i, 0)),
        compiler_params=pltpu.CompilerParams(
            dimension_semantics=("parallel",),
        ),
    )(x_c, w1_c, b1_2d, w2_c, b2_2d)

    return out[:B]


if __name__ == "__main__":
    # Small shapes consistent with the module's forward:
    # batch=8, n_feature=32, n_hidden=64, n_output=16
    B, n_feature, n_hidden, n_output = 8, 32, 64, 16

    key = jax.random.PRNGKey(0)
    kx, kw1, kb1, kw2, kb2 = jax.random.split(key, 5)

    x = jax.random.normal(kx, (B, n_feature), dtype=jnp.float32)

    # Deterministic parameter init (PyTorch-style uniform bounds, synthetic).
    bound1 = 1.0 / jnp.sqrt(n_feature)
    w1 = jax.random.uniform(kw1, (n_feature, n_hidden),
                            minval=-bound1, maxval=bound1, dtype=jnp.float32)
    b1 = jax.random.uniform(kb1, (n_hidden,),
                            minval=-bound1, maxval=bound1, dtype=jnp.float32)

    bound2 = 1.0 / jnp.sqrt(n_hidden)
    w2 = jax.random.uniform(kw2, (n_hidden, n_output),
                            minval=-bound2, maxval=bound2, dtype=jnp.float32)
    b2 = jax.random.uniform(kb2, (n_output,),
                            minval=-bound2, maxval=bound2, dtype=jnp.float32)

    out = net_forward(x, w1, b1, w2, b2)
    out = jax.block_until_ready(out)
    assert out.shape == (B, n_output)

    # Reference 1: emulate the kernel's bf16-operand / f32-accumulate math.
    xb = x.astype(jnp.bfloat16).astype(jnp.float32)
    w1b = w1.astype(jnp.bfloat16).astype(jnp.float32)
    w2b = w2.astype(jnp.bfloat16).astype(jnp.float32)
    h_ref = jnp.maximum(xb @ w1b + b1, 0.0)
    ref_bf16 = h_ref.astype(jnp.bfloat16).astype(jnp.float32) @ w2b + b2
    assert jnp.allclose(out, ref_bf16, atol=1e-3, rtol=1e-3)

    # Reference 2: full-f32 semantics of the PyTorch forward (loose tolerance
    # to cover the intentional bf16 operand quantization).
    ref_f32 = jnp.maximum(x @ w1 + b1, 0.0) @ w2 + b2
    assert jnp.allclose(out, ref_f32, atol=5e-2, rtol=5e-2)

    print("KERNEL_OK")
</pallas_src>

<mosaic_0001>
module attributes {stable_mosaic.version = 11 : i64} {
  func.func @mlp_kernel(%arg0: i32, %arg1: memref<8x32xbf16, #tpu.memory_space<vmem>>, %arg2: memref<32x64xbf16, #tpu.memory_space<vmem>>, %arg3: memref<1x64xf32, #tpu.memory_space<vmem>>, %arg4: memref<64x16xbf16, #tpu.memory_space<vmem>>, %arg5: memref<1x16xf32, #tpu.memory_space<vmem>>, %arg6: memref<8x16xf32, #tpu.memory_space<vmem>>) attributes {dimension_semantics = [#tpu.dimension_semantics<parallel>], iteration_bounds = array<i64: 1>, scalar_prefetch = 0 : i64, scratch_operands = 0 : i64, tpu.core_type = #tpu.core_type<tc>, window_params = [{transform_indices = @transform_0, window_bounds = array<i64: 8, 32>}, {pipeline_mode = #tpu.pipeline_mode<synchronous>, transform_indices = @transform_1, window_bounds = array<i64: 32, 64>}, {pipeline_mode = #tpu.pipeline_mode<synchronous>, transform_indices = @transform_2, window_bounds = array<i64: 1, 64>}, {pipeline_mode = #tpu.pipeline_mode<synchronous>, transform_indices = @transform_3, window_bounds = array<i64: 64, 16>}, {pipeline_mode = #tpu.pipeline_mode<synchronous>, transform_indices = @transform_4, window_bounds = array<i64: 1, 16>}, {transform_indices = @transform_5, window_bounds = array<i64: 8, 16>}]} {
    %c0 = arith.constant 0 : index
    %c0_0 = arith.constant 0 : index
    %0 = vector.load %arg1[%c0, %c0_0] : memref<8x32xbf16, #tpu.memory_space<vmem>>, vector<8x32xbf16>
    %c0_1 = arith.constant 0 : index
    %c0_2 = arith.constant 0 : index
    %1 = vector.load %arg2[%c0_1, %c0_2] : memref<32x64xbf16, #tpu.memory_space<vmem>>, vector<32x64xbf16>
    %cst = arith.constant dense<0.000000e+00> : vector<8x64xf32>
    %2 = tpu.matmul %0, %1, %cst {dimension_numbers = #tpu.dot_dimension_numbers<[1], [0], [0], [1], [0, 0, 1, 1], [], []>} : vector<8x32xbf16>, vector<32x64xbf16>, vector<8x64xf32> -> vector<8x64xf32>
    %c0_3 = arith.constant 0 : index
    %c0_4 = arith.constant 0 : index
    %3 = vector.load %arg3[%c0_3, %c0_4] : memref<1x64xf32, #tpu.memory_space<vmem>>, vector<1x64xf32>
    %4 = vector.broadcast %3 : vector<1x64xf32> to vector<8x64xf32>
    %5 = arith.addf %2, %4 : vector<8x64xf32>
    %cst_5 = arith.constant 0.000000e+00 : f32
    %6 = vector.broadcast %cst_5 : f32 to vector<8x64xf32>
    %7 = arith.maximumf %5, %6 : vector<8x64xf32>
    %8 = arith.truncf %7 : vector<8x64xf32> to vector<8x64xbf16>
    %c0_6 = arith.constant 0 : index
    %c0_7 = arith.constant 0 : index
    %9 = vector.load %arg4[%c0_6, %c0_7] : memref<64x16xbf16, #tpu.memory_space<vmem>>, vector<64x16xbf16>
    %cst_8 = arith.constant dense<0.000000e+00> : vector<8x16xf32>
    %10 = tpu.matmul %8, %9, %cst_8 {dimension_numbers = #tpu.dot_dimension_numbers<[1], [0], [0], [1], [0, 0, 1, 1], [], []>} : vector<8x64xbf16>, vector<64x16xbf16>, vector<8x16xf32> -> vector<8x16xf32>
    %c0_9 = arith.constant 0 : index
    %c0_10 = arith.constant 0 : index
    %11 = vector.load %arg5[%c0_9, %c0_10] : memref<1x16xf32, #tpu.memory_space<vmem>>, vector<1x16xf32>
    %12 = vector.broadcast %11 : vector<1x16xf32> to vector<8x16xf32>
    %13 = arith.addf %10, %12 : vector<8x16xf32>
    %c0_11 = arith.constant 0 : index
    %c0_12 = arith.constant 0 : index
    %14 = vector.load %arg6[%c0_11, %c0_12] : memref<8x16xf32, #tpu.memory_space<vmem>>, vector<8x16xf32>
    tpu.vector_store %arg6[%c0_11, %c0_12], %13 {strides = array<i32>} : memref<8x16xf32, #tpu.memory_space<vmem>>, vector<8x16xf32>,
    return
  }
  func.func @transform_0(%arg0: i32) -> (i32, i32) {
    %c0_i32 = arith.constant 0 : i32
    %c0_i32_0 = arith.constant 0 : i32
    return %arg0, %c0_i32 : i32, i32
  }
  func.func @transform_1(%arg0: i32) -> (i32, i32) {
    %c0_i32 = arith.constant 0 : i32
    %c0_i32_0 = arith.constant 0 : i32
    %c0_i32_1 = arith.constant 0 : i32
    return %c0_i32, %c0_i32_0 : i32, i32
  }
  func.func @transform_2(%arg0: i32) -> (i32, i32) {
    %c0_i32 = arith.constant 0 : i32
    %c0_i32_0 = arith.constant 0 : i32
    %c0_i32_1 = arith.constant 0 : i32
    return %c0_i32, %c0_i32_0 : i32, i32
  }
  func.func @transform_3(%arg0: i32) -> (i32, i32) {
    %c0_i32 = arith.constant 0 : i32
    %c0_i32_0 = arith.constant 0 : i32
    %c0_i32_1 = arith.constant 0 : i32
    return %c0_i32, %c0_i32_0 : i32, i32
  }
  func.func @transform_4(%arg0: i32) -> (i32, i32) {
    %c0_i32 = arith.constant 0 : i32
    %c0_i32_0 = arith.constant 0 : i32
    %c0_i32_1 = arith.constant 0 : i32
    return %c0_i32, %c0_i32_0 : i32, i32
  }
  func.func @transform_5(%arg0: i32) -> (i32, i32) {
    %c0_i32 = arith.constant 0 : i32
    %c0_i32_0 = arith.constant 0 : i32
    return %arg0, %c0_i32 : i32, i32
  }
}

</mosaic_0001>

<bundles_post_ra>
// kernel: tpu_custom_call.1
= control target key start
LH: loop header
LB: loop body
LE: loop exit
PB: predicated region body
PF: predicated region fallthrough
CT: control target
= control target key end

     0   :  { %v260_v1 = vmov 0.0   ;;  %vm261_vm0 = vmmov 0   ;;  %vm46_vm1 = vcmask 261120   ;;  %s323_s0 = inlined_call_operand.vmem [shape: bf16[8,32], index: 0, kind: input, shape index: {}]   ;;  %s324_s1 = inlined_call_operand.vmem [shape: bf16[32,64], index: 1, kind: input, shape index: {}]   ;;  %s325_s2 = inlined_call_operand.vmem [shape: f32[1,64], index: 2, kind: input, shape index: {}]   ;;  %s326_s3 = inlined_call_operand.vmem [shape: bf16[64,16], index: 3, kind: input, shape index: {}]   ;;  %s327_s4 = inlined_call_operand.vmem [shape: f32[1,16], index: 4, kind: input, shape index: {}]   ;;  %s328_s5 = inlined_call_operand.hbm [shape: f32[8,16], index: 5, kind: output, shape index: {}]  }
   0x1   :  { %v232_v0 = vld [vmem:[%s324_s1 + $0x8] sm:$0xff]   ;;  %209 = vmatprep.subr.bf16.mxu0 %v260_v1  ;;  %217 = vmatprep.subr.bf16.mxu1 %v260_v1  ;;  %v233_v2 = vld [vmem:[%s324_s1] sm:$0xff]   ;;  %v234_v3 = vld [vmem:[%s326_s3 + $0x18] sm:$0xff]  }
   0x2   :  { %210 = vmatpush3.bf16.msra.mxu0 %v232_v0  ;;  %213 = vmatprep.mubr.msk.bf16.mxu0 %vm261_vm0, %v260_v1  ;;  %v235_v4 = vld [vmem:[%s326_s3 + $0x10] sm:$0xff]   ;;  %v22_v5 = vld [vmem:[%s323_s0] sm:$0xf] }
   0x3   :  { %211 = vmatprep.subr.bf16.mxu0 %v260_v1  ;;  %225 = vmatprep.mubr.msk.bf16.mxu1 %vm261_vm0, %v260_v1 }
   0x4   :  { %218 = vmatpush3.bf16.msra.mxu1 %v234_v3 }
   0x5   :  { %219 = vmatprep.subr.bf16.mxu1 %v260_v1 }
   0x6   :  { %212 = vmatpush3.bf16.msra.mxu0 %v233_v2 }
   0x7   :  { %10 = vsyncpa [#allocation3], 0  ;;  %v236_v6 = vld [vmem:[%s326_s3 + $0x8] sm:$0xff]   ;;  %v237_v7 = vld [vmem:[%s326_s3] sm:$0xff]   ;;  %vm131_vm2 = vcmask 523264   ;;  %s262_s9 = smov [#allocation2]  }
   0x8   :  { %220 = vmatpush3.bf16.msra.mxu1 %v235_v4  ;;  %v191_v8 = vld [vmem:[%s325_s2] ss:$0 sm:$0xff]  ;;  %s183_s3 = sshll.u32 %s262_s9, 4  ;;  %vm175_vm3 = vcmask 130048   ;;  %s184_s3 = int_to_ptr.vmem [resolvable:$true] %s183_s3 }
   0x9   :  { %214 = vmatmul.mubr.msk.bf16.vlgmr.msra.gmra.mxu0 %vm46_vm1, %v22_v5  ;;  %221 = vmatprep.subr.bf16.mxu1 %v260_v1  ;;  %v195_v16 = vld [vmem:[%s327_s4] ss:$0 sm:$0xff]  ;;  %s238_s2 = scalar_lea.vmem %s184_s3, 128  ;;  %p243_p1 = scmp.lt.s32.totalorder %s184_s3, %s184_s3 }
   0xa   :  { %p239_p0 = scmp.ne.s32.totalorder %s184_s3, %s238_s2  ;;  %p244_p2 = scmp.lt.s32.totalorder %s238_s2, %s238_s2 }
   0xc   :  { %222 = vmatpush3.bf16.msra.mxu1 %v236_v6  ;;  %p245_p3 = por %p244_p2, %p243_p1 }
   0xd   :  { %223 = vmatprep.subr.bf16.mxu1 %v260_v1 }
   0xe   :  { %p246_p4 = pnand %p245_p3, %p239_p0 }
  0x10   :  { %224 = vmatpush3.bf16.msra.mxu1 %v237_v7 }
  0xc9   :  { %v84_v9 = vpop.f32.mrf.mxu0 }
  0xca   :  { %v85_v10 = vadd.f32 %v191_v8, %v84_v9 }
  0xcb   :  { %v215_v11 = vpop.f32.mrf.mxu0 }
  0xcc   :  { %v90_v12 = vmax.f32 %v85_v10, 0.0 }
  0xcd   :  { %v87_v13 = vpop.f32.mrf.mxu0 }
  0xce   :  { %v91_v14 = vpack.c.bf16 %v90_v12, %v90_v12 }
  0xcf   :  { %v216_v15 = vpop.f32.mrf.mxu0 }
  0xd0   :  { %226 = vmatmul.mubr.msk.bf16.vlgmr.msra.gmra.mxu1 %vm131_vm2, %v91_v14 }
 0x190   :  { %v169_v17 = vpop.f32.mrf.mxu1 }
 0x191   :  { %v170_v18 = vadd.f32 %v195_v16, %v169_v17 }
 0x192   :  { %v227_v19 = vpop.f32.mrf.mxu1 }
 0x193   :  { %176 = vst.msk [vmem:[#allocation2] sm:$0xff] %vm175_vm3, %v170_v18 }
 0x194   :  { %v172_v20 = vpop.f32.mrf.mxu1 }
 0x195   :  { %249 = shalt.err (!%p246_p4)
}
 0x196   :  { %186 = dma.vmem_to_hbm [thread:$0]  %s184_s3, 128, %s328_s5, [#allocation3]   ;;  %v228_v21 = vpop.f32.mrf.mxu1 }
 0x197   :  { %258 = dma.done.wait [#allocation3], 128  }
 0x198   :  { %259 = vsyncadd [#allocation3], 4294967168 }
 0x199   :  { %190 = vsyncpa [#allocation3], 1 }

</bundles_post_ra>
